<compile_context>
chip_gen: v6e
topology: v6e:2x2x1
jax: 0.10.0
libtpu: 0.0.40
codegen_flags: <defaults>
</compile_context>

<pallas_src>
import functools

import jax
import jax.numpy as jnp
from jax.experimental import pallas as pl
from jax.experimental.pallas import tpu as pltpu

SMOOTH = 1.0
LANES = 128
SUBLANES = 8
MAX_TILE_ROWS = 8192                 # 8192*128*4B = 4 MiB per f32 input buffer
VMEM_LIMIT = 32 * 1024 * 1024        # fits double-buffered tiles on all gens (v7x: 64 MiB phys)
NUM_CORES = 2                        # leading "parallel" axis (v7x has 2 TCs; serial elsewhere)


def _load_f32(pred_ref, targ_ref):
    """Load tiles and cast in-kernel (VPU ops — free while DMA-bound)."""
    p = pred_ref[...].astype(jnp.float32)
    t = targ_ref[...]
    if jnp.issubdtype(t.dtype, jnp.floating):
        # PyTorch `target.int()`: truncation toward zero.
        t = t.astype(jnp.int32)
    t = t.astype(jnp.float32)
    return p, t


# ---------------------------------------------------------------------------
# Single-step kernel: whole (rows, 128) slab in one block. No scratch, no
# pl.when — the two sums and the final dice happen directly.
# ---------------------------------------------------------------------------
def _dice_single_kernel(pred_ref, targ_ref, out_ref):
    p, t = _load_f32(pred_ref, targ_ref)
    inter = jnp.sum(p * t)               # numerator
    denom = jnp.sum(p + t)               # fused sum(pred) + sum(target)
    out_ref[0, 0] = 1.0 - (2.0 * inter + SMOOTH) / (denom + SMOOTH)


# ---------------------------------------------------------------------------
# Tiled kernel for large inputs.  Grid = (NUM_CORES, tiles_per_core); each
# "core" streams its half of the row tiles, accumulating into a tiny
# (2, 1, 128) VMEM accumulator, and emits (inter, denom) partials that the
# wrapper combines.
# ---------------------------------------------------------------------------
def _dice_tiled_kernel(pred_ref, targ_ref, out_ref, acc_ref, *,
                       rows, tile_rows, tiles_per_core, needs_mask):
    c = pl.program_id(0)
    i = pl.program_id(1)

    @pl.when(i == 0)
    def _():
        acc_ref[...] = jnp.zeros_like(acc_ref)

    p, t = _load_f32(pred_ref, targ_ref)
    pt = p * t
    pq = p + t

    if needs_mask:
        # Ragged last tile and/or overshoot tiles (odd tile count): zero out
        # rows past `rows`.  valid <= 0 masks an entire (clamped) tile.
        tile_idx = c * tiles_per_core + i
        valid = rows - tile_idx * tile_rows
        row_ids = jax.lax.broadcasted_iota(jnp.int32, (tile_rows, LANES), 0)
        mask = row_ids < valid
        pt = jnp.where(mask, pt, 0.0)
        pq = jnp.where(mask, pq, 0.0)

    # Row-axis reductions go to the XLU (idle in this DMA-bound kernel) and
    # keep the accumulator tiny.
    acc_ref[0] += jnp.sum(pt, axis=0, keepdims=True)
    acc_ref[1] += jnp.sum(pq, axis=0, keepdims=True)

    @pl.when(i == pl.num_programs(1) - 1)
    def _():
        out_ref[0, 0] = jnp.sum(acc_ref[0])   # per-core intersection partial
        out_ref[0, 1] = jnp.sum(acc_ref[1])   # per-core denominator partial


def _canon(x):
    """Keep native dtypes except ones Pallas/TPU can't stream directly."""
    if jnp.issubdtype(x.dtype, jnp.floating) and x.dtype.itemsize > 4:
        return x.astype(jnp.float32)
    if jnp.issubdtype(x.dtype, jnp.integer) and x.dtype.itemsize > 4:
        return x.astype(jnp.int32)
    if x.dtype == jnp.bool_:
        return x.astype(jnp.int8)
    return x


def dice_loss(pred: jax.Array, target: jax.Array) -> jax.Array:
    """pred: probabilities, target: labels (any numeric dtype). Returns scalar loss."""
    pred = _canon(pred).reshape(-1)
    target = _canon(target).reshape(-1)

    n = pred.shape[0]
    if n == 0:
        # empty input: inter = sums = 0 -> dice = 1 -> loss = 0
        return jnp.float32(0.0)

    # Pad only to a lane-dense (8k, 128) slab — never to a tile multiple.
    rows = -(-n // LANES)
    rows = -(-rows // SUBLANES) * SUBLANES
    n_pad = rows * LANES
    if n_pad != n:
        pred = jnp.pad(pred, (0, n_pad - n))       # zeros are neutral for both sums
        target = jnp.pad(target, (0, n_pad - n))
    pred_2d = pred.reshape(rows, LANES)
    targ_2d = target.reshape(rows, LANES)

    tile_rows = min(rows, MAX_TILE_ROWS)
    n_tiles = -(-rows // tile_rows)

    if n_tiles == 1:
        # Single grid step: no accumulator carry, no init/finalize overhead.
        out = pl.pallas_call(
            _dice_single_kernel,
            out_shape=jax.ShapeDtypeStruct((1, 1), jnp.float32),
            grid_spec=pltpu.PrefetchScalarGridSpec(
                num_scalar_prefetch=0,
                grid=(1,),
                in_specs=[
                    pl.BlockSpec((tile_rows, LANES), lambda i: (0, 0)),
                    pl.BlockSpec((tile_rows, LANES), lambda i: (0, 0)),
                ],
                out_specs=pl.BlockSpec(
                    (1, 1), lambda i: (0, 0), memory_space=pltpu.SMEM
                ),
            ),
            compiler_params=pltpu.CompilerParams(
                dimension_semantics=("arbitrary",),
                vmem_limit_bytes=VMEM_LIMIT,
            ),
        )(pred_2d, targ_2d)
        return out[0, 0]

    # ---- tiled, two-core streaming reduction ----
    tiles_per_core = -(-n_tiles // NUM_CORES)
    needs_mask = (rows % tile_rows != 0) or (tiles_per_core * NUM_CORES != n_tiles)

    def in_map(c, i):
        # Clamp so overshoot steps (odd tile count) re-read the last tile;
        # they are fully masked out in-kernel.
        return (jnp.minimum(c * tiles_per_core + i, n_tiles - 1), 0)

    kernel = functools.partial(
        _dice_tiled_kernel,
        rows=rows,
        tile_rows=tile_rows,
        tiles_per_core=tiles_per_core,
        needs_mask=needs_mask,
    )

    partials = pl.pallas_call(
        kernel,
        out_shape=jax.ShapeDtypeStruct((NUM_CORES, 2), jnp.float32),
        grid_spec=pltpu.PrefetchScalarGridSpec(
            num_scalar_prefetch=0,
            grid=(NUM_CORES, tiles_per_core),
            in_specs=[
                pl.BlockSpec((tile_rows, LANES), in_map),
                pl.BlockSpec((tile_rows, LANES), in_map),
            ],
            out_specs=pl.BlockSpec(
                (1, 2), lambda c, i: (c, 0), memory_space=pltpu.SMEM
            ),
            scratch_shapes=[pltpu.VMEM((2, 1, LANES), jnp.float32)],
        ),
        compiler_params=pltpu.CompilerParams(
            dimension_semantics=("parallel", "arbitrary"),
            vmem_limit_bytes=VMEM_LIMIT,
        ),
    )(pred_2d, targ_2d)

    # Combine per-core (inter, denom) partials -> dice (NOT an average of dices).
    inter = partials[:, 0].sum()
    denom = partials[:, 1].sum()
    return 1.0 - (2.0 * inter + SMOOTH) / (denom + SMOOTH)


def dice_loss_ref(pred, target):
    p = pred.astype(jnp.float32).reshape(-1)
    t = target
    if jnp.issubdtype(jnp.asarray(t).dtype, jnp.floating):
        t = t.astype(jnp.int32)
    t = t.astype(jnp.float32).reshape(-1)
    inter = jnp.sum(p * t)
    dice = (2.0 * inter + SMOOTH) / (jnp.sum(p) + jnp.sum(t) + SMOOTH)
    return 1.0 - dice


if __name__ == "__main__":
    key = jax.random.PRNGKey(0)
    ks = jax.random.split(key, 10)

    # ---- small NCHW input (matches the module's expected use): single-step path
    pred = jax.random.uniform(ks[0], (2, 4, 16, 16), dtype=jnp.float32)
    target = (jax.random.uniform(ks[1], (2, 4, 16, 16)) > 0.5).astype(jnp.float32)
    loss = dice_loss(pred, target)
    jax.block_until_ready(loss)
    assert jnp.allclose(loss, dice_loss_ref(pred, target), atol=1e-5, rtol=1e-5)

    # ---- mid-size input: still single-block fast path with the larger tiles
    pred_mid = jax.random.uniform(ks[2], (4, 8, 64, 128), dtype=jnp.float32)
    target_mid = (jax.random.uniform(ks[3], (4, 8, 64, 128)) > 0.5).astype(jnp.float32)
    loss_mid = dice_loss(pred_mid, target_mid)
    jax.block_until_ready(loss_mid)
    assert jnp.allclose(loss_mid, dice_loss_ref(pred_mid, target_mid), atol=1e-4, rtol=1e-5)

    # ---- large input: tiled two-core path, odd tile count + ragged last tile
    pred_big = jax.random.uniform(ks[4], (20, 8, 128, 128), dtype=jnp.float32)
    target_big = (jax.random.uniform(ks[5], (20, 8, 128, 128)) > 0.5).astype(jnp.float32)
    loss_big = dice_loss(pred_big, target_big)
    jax.block_until_ready(loss_big)
    assert jnp.allclose(loss_big, dice_loss_ref(pred_big, target_big), atol=1e-3, rtol=1e-5)

    # ---- ragged element count + fractional float target (exercises .int() truncation)
    pred_rag = jax.random.uniform(ks[6], (2, 3, 7, 9), dtype=jnp.float32)
    target_rag = jax.random.uniform(ks[7], (2, 3, 7, 9), dtype=jnp.float32) * 2.0
    loss_rag = dice_loss(pred_rag, target_rag)
    jax.block_until_ready(loss_rag)
    assert jnp.allclose(loss_rag, dice_loss_ref(pred_rag, target_rag), atol=1e-5, rtol=1e-5)

    # ---- native narrow dtypes (bf16 pred, int32 target) cast in-kernel
    pred_bf = jax.random.uniform(ks[8], (2, 4, 16, 16), dtype=jnp.float32).astype(jnp.bfloat16)
    target_i = jax.random.randint(ks[9], (2, 4, 16, 16), 0, 2, dtype=jnp.int32)
    loss_bf = dice_loss(pred_bf, target_i)
    jax.block_until_ready(loss_bf)
    assert jnp.allclose(loss_bf, dice_loss_ref(pred_bf, target_i), atol=1e-4, rtol=1e-4)

    print("KERNEL_OK")
</pallas_src>

<mosaic_0001>
module attributes {stable_mosaic.version = 11 : i64} {
  func.func @_dice_single_kernel(%arg0: i32, %arg1: memref<16x128xf32, #tpu.memory_space<vmem>>, %arg2: memref<16x128xf32, #tpu.memory_space<vmem>>, %arg3: memref<1x1xf32, #tpu.memory_space<smem>>) attributes {dimension_semantics = [#tpu.dimension_semantics<arbitrary>], iteration_bounds = array<i64: 1>, scalar_prefetch = 0 : i64, scratch_operands = 0 : i64, tpu.core_type = #tpu.core_type<tc>, window_params = [{pipeline_mode = #tpu.pipeline_mode<synchronous>, transform_indices = @transform_0, window_bounds = array<i64: 16, 128>}, {pipeline_mode = #tpu.pipeline_mode<synchronous>, transform_indices = @transform_1, window_bounds = array<i64: 16, 128>}, {transform_indices = @transform_2, window_bounds = array<i64: 1, 1>}]} {
    %c0 = arith.constant 0 : index
    %c0_0 = arith.constant 0 : index
    %0 = vector.load %arg1[%c0, %c0_0] : memref<16x128xf32, #tpu.memory_space<vmem>>, vector<16x128xf32>
    %c0_1 = arith.constant 0 : index
    %c0_2 = arith.constant 0 : index
    %1 = vector.load %arg2[%c0_1, %c0_2] : memref<16x128xf32, #tpu.memory_space<vmem>>, vector<16x128xf32>
    %2 = arith.fptosi %1 : vector<16x128xf32> to vector<16x128xi32>
    %3 = arith.sitofp %2 : vector<16x128xi32> to vector<16x128xf32>
    %4 = arith.mulf %0, %3 : vector<16x128xf32>
    %5 = vector.shape_cast %4 : vector<16x128xf32> to vector<1x16x128xf32>
    %cst = arith.constant dense<0.000000e+00> : vector<1xf32>
    %6 = vector.multi_reduction <add>, %5, %cst [1, 2] : vector<1x16x128xf32> to vector<1xf32>
    %7 = vector.shape_cast %6 : vector<1xf32> to vector<1x1x1xf32>
    %8 = vector.extract %7[0, 0, 0] : f32 from vector<1x1x1xf32>
    %9 = arith.addf %0, %3 : vector<16x128xf32>
    %10 = vector.shape_cast %9 : vector<16x128xf32> to vector<1x16x128xf32>
    %cst_3 = arith.constant dense<0.000000e+00> : vector<1xf32>
    %11 = vector.multi_reduction <add>, %10, %cst_3 [1, 2] : vector<1x16x128xf32> to vector<1xf32>
    %12 = vector.shape_cast %11 : vector<1xf32> to vector<1x1x1xf32>
    %13 = vector.extract %12[0, 0, 0] : f32 from vector<1x1x1xf32>
    %cst_4 = arith.constant 2.000000e+00 : f32
    %14 = arith.mulf %cst_4, %8 : f32
    %cst_5 = arith.constant 1.000000e+00 : f32
    %15 = arith.addf %14, %cst_5 : f32
    %cst_6 = arith.constant 1.000000e+00 : f32
    %16 = arith.addf %13, %cst_6 : f32
    %17 = arith.divf %15, %16 : f32
    %cst_7 = arith.constant 1.000000e+00 : f32
    %18 = arith.subf %cst_7, %17 : f32
    %c0_8 = arith.constant 0 : index
    %c0_9 = arith.constant 0 : index
    %19 = memref.load %arg3[%c0_8, %c0_9] : memref<1x1xf32, #tpu.memory_space<smem>>
    memref.store %18, %arg3[%c0_8, %c0_9] : memref<1x1xf32, #tpu.memory_space<smem>>
    return
  }
  func.func @transform_0(%arg0: i32) -> (i32, i32) {
    %c0_i32 = arith.constant 0 : i32
    %c0_i32_0 = arith.constant 0 : i32
    %c0_i32_1 = arith.constant 0 : i32
    return %c0_i32, %c0_i32_0 : i32, i32
  }
  func.func @transform_1(%arg0: i32) -> (i32, i32) {
    %c0_i32 = arith.constant 0 : i32
    %c0_i32_0 = arith.constant 0 : i32
    %c0_i32_1 = arith.constant 0 : i32
    return %c0_i32, %c0_i32_0 : i32, i32
  }
  func.func @transform_2(%arg0: i32) -> (i32, i32) {
    %c0_i32 = arith.constant 0 : i32
    %c0_i32_0 = arith.constant 0 : i32
    %c0_i32_1 = arith.constant 0 : i32
    return %c0_i32, %c0_i32_0 : i32, i32
  }
}

</mosaic_0001>

<bundles_post_ra>
// kernel: tpu_custom_call.1
= control target key start
LH: loop header
LB: loop body
LE: loop exit
PB: predicated region body
PF: predicated region fallthrough
CT: control target
= control target key end

     0   :  { %7 = vsyncpa [#allocation3], 0  ;;  %s197_s0 = inlined_call_operand.hbm [shape: f32[16,128], index: 0, kind: input, shape index: {}]   ;;  %s198_s1 = inlined_call_operand.hbm [shape: f32[16,128], index: 1, kind: input, shape index: {}]   ;;  %s199_s2 = inlined_call_operand.hbm [shape: f32[1,1], index: 2, kind: output, shape index: {}]  }
   0x1   :  { %8 = vsyncpa [#allocation6], 0 }
   0x2   :  { %9 = vsyncpa [#allocation4], 0  ;;  %s168_s9 = smov [#allocation2]  }
   0x3   :  { %s15_s10 = sshll.u32 %s168_s9, 4  ;;  %s16_s10 = int_to_ptr.vmem [resolvable:$true] %s15_s10 }
   0x4   :  { %s122_s11 = scalar_lea.vmem %s16_s10, 256  ;;  %p127_p1 = scmp.lt.s32.totalorder %s16_s10, %s16_s10 }
   0x5   :  { %p123_p0 = scmp.ne.s32.totalorder %s16_s10, %s122_s11  ;;  %p128_p2 = scmp.lt.s32.totalorder %s122_s11, %s122_s11 }
   0x7   :  { %p129_p3 = por %p128_p2, %p127_p1 }
   0x9   :  { %p130_p4 = pnand %p129_p3, %p123_p0 }
   0xb   :  { %133 = shalt.err (!%p130_p4)
}
   0xc   :  { %s169_s12 = smov 128   ;;  %s170_s13 = smov 8  }
   0xd   :  { %21 = dma.hbm_to_vmem [thread:$0]  %s197_s0, 256, %s16_s10, [#allocation3], %s169_s12, %s169_s12, %s170_s13  }
   0xe   :  { %s171_s16 = smov [#allocation5]  }
   0xf   :  { %s27_s17 = sshll.u32 %s171_s16, 4  ;;  %s28_s17 = int_to_ptr.vmem [resolvable:$true] %s27_s17 }
  0x10   :  { %s142_s18 = scalar_lea.vmem %s28_s17, 256  ;;  %p147_p6 = scmp.lt.s32.totalorder %s28_s17, %s28_s17 }
  0x11   :  { %p143_p5 = scmp.ne.s32.totalorder %s28_s17, %s142_s18  ;;  %p148_p7 = scmp.lt.s32.totalorder %s142_s18, %s142_s18 }
  0x13   :  { %p149_p8 = por %p148_p7, %p147_p6 }
  0x15   :  { %p150_p9 = pnand %p149_p8, %p143_p5 }
  0x17   :  { %153 = shalt.err (!%p150_p9)
}
  0x18   :  { %33 = dma.hbm_to_vmem [thread:$0]  %s198_s1, 256, %s28_s17, [#allocation6], %s169_s12, %s169_s12, %s170_s13  }
  0x19   :  { %162 = dma.done.wait [#allocation3], 256  }
  0x1a   :  { %163 = vsyncadd [#allocation3], 4294967040 }
  0x1b   :  { %164 = dma.done.wait [#allocation6], 256  }
  0x1c   :  { %165 = vsyncadd [#allocation6], 4294967040  ;;  %v42_v0 = vld [vmem:[#allocation5] sm:$0xff]  ;;  %v43_v1 = vld [vmem:[#allocation5 + $0x8] sm:$0xff]  ;;  %s172_s27 = smov [#allocation7]  }
  0x1d   :  { %v97_v2 = vtrunc.f32 %v42_v0  ;;  %v99_v3 = vtrunc.f32 %v43_v1  ;;  %v40_v5 = vld [vmem:[#allocation2] sm:$0xff]  ;;  %v41_v7 = vld [vmem:[#allocation2 + $0x8] sm:$0xff] }
  0x1f   :  { %v98_v4 = vcvt.f32.s32 %v97_v2  ;;  %v100_v6 = vcvt.f32.s32 %v99_v3 }
  0x21   :  { %v46_v8 = vcvt.s32.f32 %v98_v4  ;;  %v47_v9 = vcvt.s32.f32 %v100_v6 }
  0x23   :  { %v48_v10 = vmul.f32 %v46_v8, %v40_v5  ;;  %v49_v11 = vmul.f32 %v47_v9, %v41_v7  ;;  %v60_v12 = vadd.f32 %v46_v8, %v40_v5  ;;  %v61_v13 = vadd.f32 %v47_v9, %v41_v7 }
  0x25   :  { %v50_v14 = vadd.f32 %v49_v11, %v48_v10  ;;  %v62_v15 = vadd.f32 %v61_v13, %v60_v12 }
  0x27   :  { %51 = vadd.xlane.f32.xlu0 %v50_v14 }
  0x2b   :  { %63 = vadd.xlane.f32.xlu0 %v62_v15 }
  0xb0   :  { %v52_v16 = vpop.xlane.xlu0 %51 }
  0xb1   :  { %v53_v17 = vrot.slane %v52_v16, 4 }
  0xb3   :  { %v54_v18 = vadd.f32 %v53_v17, %v52_v16 }
  0xb4   :  { %v64_v19 = vpop.xlane.xlu0 %63 }
  0xb5   :  { %v55_v20 = vrot.slane %v54_v18, 2  ;;  %v65_v21 = vrot.slane %v64_v19, 4 }
  0xb7   :  { %v66_v22 = vadd.f32 %v65_v21, %v64_v19  ;;  %v56_v23 = vadd.f32 %v55_v20, %v54_v18 }
  0xb9   :  { %v67_v24 = vrot.slane %v66_v22, 2  ;;  %v57_v25 = vrot.slane %v56_v23, 1 }
  0xbb   :  { %v68_v26 = vadd.f32 %v67_v24, %v66_v22  ;;  %v58_v27 = vadd.f32 %v57_v25, %v56_v23 }
  0xbd   :  { %101 = vpush %v58_v27  ;;  %v69_v28 = vrot.slane %v68_v26, 1 }
  0xbf   :  { %v70_v29 = vadd.f32 %v69_v28, %v68_v26 }
  0xc1   :  { %103 = vpush %v70_v29 }
  0xee   :  { %s102_s0 = spop %101 }
  0xef   :  { %s72_s22 = smul.f32 2.0, %s102_s0 }
  0xf1   :  { %s73_s23 = sadd.f32 1.0, %s72_s22 }
  0xf2   :  { %s104_s1 = spop %103 }
  0xf3   :  { %s74_s21 = sadd.f32 1.0, %s104_s1 }
  0xf5   :  { %v75_v30 = vstv %s74_s21 }
  0xf6   :  { %112 = vrcp.f32 %v75_v30 }
 0x103   :  { %v113_v31 = vpop.eup %112 }
 0x104   :  { %105 = vpush %v113_v31 }
 0x135   :  { %s106_s24 = spop %105 }
 0x136   :  { %s78_s25 = smul.f32 %s106_s24, %s73_s23 }
 0x138   :  { %s79_s26 = ssub.f32 1.0, %s78_s25 }
 0x13a   :  { %81 = sst [smem:[#allocation7]] %s79_s26 }
 0x13b   :  { %89 = dma.smem_to_hbm %s172_s27, 16, %s199_s2, [#allocation4]  }
 0x13c   :  { %166 = dma.done.wait [#allocation4], 16  }
 0x13d   :  { %167 = vsyncadd [#allocation4], 4294967280 }
 0x13e   :  { %93 = sfence }
 0x13f   :  { %94 = vsyncpa [#allocation3], 1 }
 0x140   :  { %95 = vsyncpa [#allocation6], 1 }
 0x141   :  { %96 = vsyncpa [#allocation4], 1 }

</bundles_post_ra>
